<compile_context>
chip_gen: v6e
topology: v6e:2x2x1
jax: 0.10.0
libtpu: 0.0.40
codegen_flags: <defaults>
</compile_context>

<pallas_src>
import functools
import math

import jax
import jax.numpy as jnp
from jax.experimental import pallas as pl
from jax.experimental.pallas import tpu as pltpu


def _round_up(x, n):
    return ((x + n - 1) // n) * n


# ---------------------------------------------------------------------------
# Pass 1: row-wise L2 normalization (matches F.normalize(p=2, dim=1, eps=1e-12))
# ---------------------------------------------------------------------------
def _l2_normalize_kernel(x_ref, o_ref):
    x = x_ref[...].astype(jnp.float32)                       # (T, D)
    # 1/max(||x||, 1e-12) == rsqrt(max(sum(x^2), 1e-24))  (sqrt is monotonic)
    inv = jax.lax.rsqrt(jnp.maximum(jnp.sum(x * x, axis=-1, keepdims=True),
                                    1e-24))
    o_ref[...] = (x * inv).astype(o_ref.dtype)


def _l2_normalize_rows(a, tile):
    rows, d = a.shape
    return pl.pallas_call(
        _l2_normalize_kernel,
        out_shape=jax.ShapeDtypeStruct((rows, d), a.dtype),
        grid=(rows // tile,),
        in_specs=[pl.BlockSpec((tile, d), lambda i: (i, 0))],
        out_specs=pl.BlockSpec((tile, d), lambda i: (i, 0)),
        compiler_params=pltpu.CompilerParams(
            dimension_semantics=("parallel",)),
    )(a)


# ---------------------------------------------------------------------------
# Pass 2: tiled cosine matmul + arc-margin on the label column only
# ---------------------------------------------------------------------------
def _arc_margin_kernel(xn_ref, wn_ref, lab_ref, out_ref, *,
                       s, cos_m, sin_m, th, mm, easy_margin, tu):
    xn = xn_ref[...]                     # (TB, D) compute dtype (pre-normalized)
    wn = wn_ref[...]                     # (TU, D) compute dtype (pre-normalized)
    lab = lab_ref[...]                   # (TB, 1) int32 mapped labels (-1 = pad)

    # cosine = xn @ wn.T, expressed directly as a contraction on dim 1 of both
    # operands so Mosaic feeds the MXU without an XLU transpose pass.
    cosine = jax.lax.dot_general(
        xn, wn,
        dimension_numbers=(((1,), (1,)), ((), ())),
        preferred_element_type=jnp.float32)                  # (TB, TU) f32

    # one-hot of the (globally indexed) label column inside this U tile.
    col0 = pl.program_id(1) * tu
    col_ids = col0 + jax.lax.broadcasted_iota(jnp.int32, cosine.shape, 1)
    one_hot = (col_ids == lab).astype(jnp.float32)           # (TB, TU)

    # Arc margin only needs the label column: reduce it out, run the
    # sqrt/clip/select epilogue on a (TB, 1) column instead of (TB, TU).
    cos_col = jnp.sum(one_hot * cosine, axis=-1, keepdims=True)      # (TB, 1)
    sine_col = jnp.sqrt(jnp.clip(1.0 - cos_col * cos_col, 0.0, 1.0))
    phi_col = cos_col * cos_m - sine_col * sin_m
    if easy_margin:
        phi_col = jnp.where(cos_col > 0.0, phi_col, cos_col)
    else:
        phi_col = jnp.where(cos_col > th, phi_col, cos_col - mm)

    # output = one_hot*phi + (1-one_hot)*cosine  ==  cosine + one_hot*(phi - cos)
    out_ref[...] = ((cosine + one_hot * (phi_col - cos_col)) * s
                    ).astype(out_ref.dtype)


# ---------------------------------------------------------------------------
# Eager wrapper reproducing PartialArcMarginProduct.forward
# ---------------------------------------------------------------------------
def partial_arc_margin_product(x, label, weight, *, s=30.0, m=0.5,
                               easy_margin=False):
    """x: (B, D) float; label: (B,) int; weight: (out_features, D) float.

    Returns (output, mapped_label) with output (B, U), U = #unique labels in
    the batch.  Must be called eagerly (U is data-dependent).
    """
    label = label.astype(jnp.int32)

    # ---- glue: unique labels, partial weight gather, label remap (eager) ----
    unique_labels = jnp.unique(label)                       # (U,) sorted
    partial_weight = weight[unique_labels]                  # (U, D)
    mapped_label = jnp.searchsorted(unique_labels, label).astype(jnp.int32)

    B, D = x.shape
    U = int(unique_labels.shape[0])

    # Keep the native input dtype through the kernels (no forced f32 upcast);
    # normalization and matmul accumulation are done in f32 regardless.
    cdtype = x.dtype
    itemsize = jnp.dtype(cdtype).itemsize
    pw = partial_weight.astype(cdtype)

    # ---- lane-dense padding / tiling ----
    TU = 256                                   # MXU-friendly, lane-dense output
    U_pad = _round_up(U, TU)
    TB = 256 if B >= 256 else _round_up(B, 8)  # tiny batches stay small
    B_pad = _round_up(B, TB)

    x_p = jnp.pad(x, ((0, B_pad - B), (0, 0)))
    w_p = jnp.pad(pw, ((0, U_pad - U), (0, 0)))
    lab_p = jnp.pad(mapped_label, (0, B_pad - B),
                    constant_values=-1).reshape(B_pad, 1)   # -1 never matches

    # ---- pass 1: normalize rows of x and of the partial weight once ----
    xn = _l2_normalize_rows(x_p, tile=TB)
    wn = _l2_normalize_rows(w_p, tile=TU)

    # ---- pass 2: tiled cosine + arc margin ----
    cos_m = math.cos(m)
    sin_m = math.sin(m)
    th = math.cos(math.pi - m)
    mm = math.sin(math.pi - m) * m

    kernel = functools.partial(
        _arc_margin_kernel,
        s=float(s), cos_m=cos_m, sin_m=sin_m, th=th, mm=mm,
        easy_margin=easy_margin, tu=TU)

    grid = (B_pad // TB, U_pad // TU)
    cost = pl.CostEstimate(
        flops=2 * B_pad * U_pad * D,
        transcendentals=B_pad * (U_pad // TU),
        bytes_accessed=(B_pad * D + U_pad * D * (B_pad // TB)) * itemsize
        + B_pad * U_pad * 4)

    out = pl.pallas_call(
        kernel,
        out_shape=jax.ShapeDtypeStruct((B_pad, U_pad), jnp.float32),
        grid=grid,
        in_specs=[
            pl.BlockSpec((TB, D), lambda i, j: (i, 0)),     # normalized input
            pl.BlockSpec((TU, D), lambda i, j: (j, 0)),     # normalized weight
            pl.BlockSpec((TB, 1), lambda i, j: (i, 0)),     # mapped labels
        ],
        out_specs=pl.BlockSpec((TB, TU), lambda i, j: (i, j)),
        compiler_params=pltpu.CompilerParams(
            dimension_semantics=("parallel", "parallel"),   # megacore on v7x
            vmem_limit_bytes=48 * 1024 * 1024),
        cost_estimate=cost,
    )(xn, wn, lab_p)

    return out[:B, :U], mapped_label


# ---------------------------------------------------------------------------
# Pure-JAX reference for correctness checking
# ---------------------------------------------------------------------------
def _reference(x, label, weight, *, s=30.0, m=0.5, easy_margin=False):
    label = label.astype(jnp.int32)
    unique_labels = jnp.unique(label)
    pw = weight[unique_labels]
    mapped = jnp.searchsorted(unique_labels, label)

    def l2n(a):
        n = jnp.sqrt(jnp.sum(a * a, axis=-1, keepdims=True))
        return a / jnp.maximum(n, 1e-12)

    cosine = l2n(x) @ l2n(pw).T
    sine = jnp.sqrt(jnp.clip(1.0 - cosine ** 2, 0.0, 1.0))
    phi = cosine * math.cos(m) - sine * math.sin(m)
    if easy_margin:
        phi = jnp.where(cosine > 0, phi, cosine)
    else:
        phi = jnp.where(cosine > math.cos(math.pi - m), phi,
                        cosine - math.sin(math.pi - m) * m)
    one_hot = jax.nn.one_hot(mapped, cosine.shape[1], dtype=cosine.dtype)
    return (one_hot * phi + (1.0 - one_hot) * cosine) * s, mapped.astype(jnp.int32)


if __name__ == "__main__":
    key = jax.random.PRNGKey(0)
    k_x, k_w, k_l = jax.random.split(key, 3)

    B = 8              # batch
    in_features = 32
    out_features = 40  # TOTAL number of classes

    x = jax.random.normal(k_x, (B, in_features), dtype=jnp.float32)
    label = jax.random.randint(k_l, (B,), 0, out_features, dtype=jnp.int32)

    # Xavier-uniform init of the full (out_features, in_features) weight.
    bound = math.sqrt(6.0 / (in_features + out_features))
    weight = jax.random.uniform(
        k_w, (out_features, in_features), dtype=jnp.float32,
        minval=-bound, maxval=bound)

    out, mapped_label = partial_arc_margin_product(
        x, label, weight, s=30.0, m=0.5, easy_margin=False)
    out = jax.block_until_ready(out)
    mapped_label = jax.block_until_ready(mapped_label)

    ref_out, ref_mapped = _reference(x, label, weight, s=30.0, m=0.5,
                                     easy_margin=False)
    assert out.shape == ref_out.shape, (out.shape, ref_out.shape)
    assert jnp.allclose(out, ref_out, atol=1e-4, rtol=1e-4)
    assert jnp.array_equal(mapped_label, ref_mapped)

    print("KERNEL_OK")
</pallas_src>

<mosaic_0001>
module attributes {stable_mosaic.version = 11 : i64} {
  func.func @_l2_normalize_kernel(%arg0: i32, %arg1: memref<8x32xf32, #tpu.memory_space<vmem>>, %arg2: memref<8x32xf32, #tpu.memory_space<vmem>>) attributes {dimension_semantics = [#tpu.dimension_semantics<parallel>], iteration_bounds = array<i64: 1>, scalar_prefetch = 0 : i64, scratch_operands = 0 : i64, tpu.core_type = #tpu.core_type<tc>, window_params = [{transform_indices = @transform_0, window_bounds = array<i64: 8, 32>}, {transform_indices = @transform_1, window_bounds = array<i64: 8, 32>}]} {
    %c0 = arith.constant 0 : index
    %c0_0 = arith.constant 0 : index
    %0 = vector.load %arg1[%c0, %c0_0] : memref<8x32xf32, #tpu.memory_space<vmem>>, vector<8x32xf32>
    %1 = arith.mulf %0, %0 : vector<8x32xf32>
    %cst = arith.constant dense<0.000000e+00> : vector<8xf32>
    %2 = vector.multi_reduction <add>, %1, %cst [1] : vector<8x32xf32> to vector<8xf32>
    %3 = vector.shape_cast %2 : vector<8xf32> to vector<8x1xf32>
    %cst_1 = arith.constant 1.000000e-24 : f32
    %4 = vector.broadcast %cst_1 : f32 to vector<8x1xf32>
    %5 = arith.maximumf %3, %4 : vector<8x1xf32>
    %6 = math.rsqrt %5 : vector<8x1xf32>
    %7 = vector.broadcast %6 : vector<8x1xf32> to vector<8x32xf32>
    %8 = arith.mulf %0, %7 : vector<8x32xf32>
    %c0_2 = arith.constant 0 : index
    %c0_3 = arith.constant 0 : index
    %9 = vector.load %arg2[%c0_2, %c0_3] : memref<8x32xf32, #tpu.memory_space<vmem>>, vector<8x32xf32>
    tpu.vector_store %arg2[%c0_2, %c0_3], %8 {strides = array<i32>} : memref<8x32xf32, #tpu.memory_space<vmem>>, vector<8x32xf32>,
    return
  }
  func.func @transform_0(%arg0: i32) -> (i32, i32) {
    %c0_i32 = arith.constant 0 : i32
    %c0_i32_0 = arith.constant 0 : i32
    return %arg0, %c0_i32 : i32, i32
  }
  func.func @transform_1(%arg0: i32) -> (i32, i32) {
    %c0_i32 = arith.constant 0 : i32
    %c0_i32_0 = arith.constant 0 : i32
    return %arg0, %c0_i32 : i32, i32
  }
}

</mosaic_0001>

<bundles_post_ra>
// kernel: tpu_custom_call.1
= control target key start
LH: loop header
LB: loop body
LE: loop exit
PB: predicated region body
PF: predicated region fallthrough
CT: control target
= control target key end

     0   :  { %6 = vsyncpa [#allocation3], 0  ;;  %s112_s0 = inlined_call_operand.hbm [shape: f32[8,32], index: 0, kind: input, shape index: {}]   ;;  %s113_s1 = inlined_call_operand.hbm [shape: f32[8,32], index: 1, kind: output, shape index: {}]  }
   0x1   :  { %7 = vsyncpa [#allocation4], 0  ;;  %s94_s6 = smov [#allocation2]  }
   0x2   :  { %s14_s7 = sshll.u32 %s94_s6, 4  ;;  %s15_s7 = int_to_ptr.vmem [resolvable:$true] %s14_s7 }
   0x3   :  { %s58_s8 = scalar_lea.vmem %s15_s7, 128  ;;  %p63_p1 = scmp.lt.s32.totalorder %s15_s7, %s15_s7 }
   0x4   :  { %p59_p0 = scmp.ne.s32.totalorder %s15_s7, %s58_s8  ;;  %p64_p2 = scmp.lt.s32.totalorder %s58_s8, %s58_s8 }
   0x6   :  { %p65_p3 = por %p64_p2, %p63_p1 }
   0x8   :  { %p66_p4 = pnand %p65_p3, %p59_p0 }
   0xa   :  { %69 = shalt.err (!%p66_p4)
}
   0xb   :  { %17 = dma.hbm_to_vmem [thread:$0]  %s112_s0, 128, %s15_s7, [#allocation3]  }
   0xc   :  { %90 = dma.done.wait [#allocation3], 128  }
   0xd   :  { %91 = vsyncadd [#allocation3], 4294967168  ;;  %v21_v0 = vld [vmem:[#allocation2] sm:$0xff]  ;;  %vm23_vm0 = vcmask 261120   ;;  %s95_s11 = smov [#allocation5]  }
   0xe   :  { %v22_v1 = vmul.f32 %v21_v0, %v21_v0  ;;  %s37_s12 = sshll.u32 %s95_s11, 4  ;;  %s38_s12 = int_to_ptr.vmem [resolvable:$true] %s37_s12 }
   0xf   :  { %s70_s13 = scalar_lea.vmem %s38_s12, 128  ;;  %p75_p6 = scmp.lt.s32.totalorder %s38_s12, %s38_s12 }
  0x10   :  { %v24_v2 = vsel %vm23_vm0, %v22_v1, 0.0  ;;  %p71_p5 = scmp.ne.s32.totalorder %s38_s12, %s70_s13  ;;  %p76_p7 = scmp.lt.s32.totalorder %s70_s13, %s70_s13 }
  0x11   :  { %25 = vadd.xlane.f32.xlu0 %v24_v2 }
  0x12   :  { %p77_p8 = por %p76_p7, %p75_p6 }
  0x14   :  { %p78_p9 = pnand %p77_p8, %p71_p5 }
  0x9a   :  { %v26_v3 = vpop.xlane.xlu0 %25 }
  0x9b   :  { %v27_v4 = vmax.f32 %v26_v3, 1e-24 }
  0x9d   :  { %48 = vrsqrt.f32 %v27_v4 }
  0xaa   :  { %v49_v5 = vpop.eup %48 }
  0xab   :  { %v29_v6 = vmul.f32 %v49_v5, %v21_v0 }
  0xad   :  { %30 = vst.msk [vmem:[#allocation5] sm:$0xff] %vm23_vm0, %v29_v6 }
  0xae   :  { %81 = shalt.err (!%p78_p9)
}
  0xaf   :  { %40 = dma.vmem_to_hbm [thread:$0]  %s38_s12, 128, %s113_s1, [#allocation4]  }
  0xb0   :  { %92 = dma.done.wait [#allocation4], 128  }
  0xb1   :  { %93 = vsyncadd [#allocation4], 4294967168 }
  0xb2   :  { %44 = vsyncpa [#allocation3], 1 }
  0xb3   :  { %45 = vsyncpa [#allocation4], 1 }

</bundles_post_ra>
